<compile_context>
chip_gen: v7x
topology: tpu7x:2x2x1
jax: 0.10.0
libtpu: 0.0.40
codegen_flags: <defaults>
</compile_context>

<pallas_src>
import functools

import jax
import jax.numpy as jnp
from jax.experimental import pallas as pl
from jax.experimental.pallas import tpu as pltpu


def _round_up(x: int, m: int) -> int:
    return ((x + m - 1) // m) * m


@functools.lru_cache(maxsize=None)
def _vmem_capacity_bytes() -> int:
    try:
        return int(pltpu.get_tpu_info().vmem_capacity_bytes)
    except Exception:
        return 64 << 20  # conservative (v7x-sized) fallback


def _block_spec(shape, index_map, *, invariant: bool) -> pl.BlockSpec:
    """BlockSpec; single-buffer operands whose block index never changes."""
    if invariant:
        try:
            return pl.BlockSpec(shape, index_map, pipeline_mode=pl.Buffered(1))
        except (TypeError, AttributeError):
            pass  # older jax without pipeline_mode/Buffered: default buffering
    return pl.BlockSpec(shape, index_map)


def _mlp_kernel(x_ref, w1_ref, b1_ref, w2_ref, b2_ref, o_ref, acc_ref):
    h_idx = pl.program_id(1)

    @pl.when(h_idx == 0)
    def _():
        acc_ref[...] = jnp.zeros_like(acc_ref)

    # Layer 1: (TM, D_in) @ (D_in, TH) + (1, TH), ReLU.  x is cast to the
    # (bf16) weight dtype in-kernel so the wrapper never re-writes x to HBM;
    # accumulation stays f32 via preferred_element_type.
    x = x_ref[...].astype(w1_ref.dtype)
    h = jnp.dot(x, w1_ref[...], preferred_element_type=jnp.float32)
    h = jnp.maximum(h + b1_ref[...], 0.0)
    # Dropout(p=0.0) is the identity -> nothing to do.

    # Layer 2 partial product over this hidden chunk, accumulated in f32.
    acc_ref[...] += jnp.dot(h.astype(w2_ref.dtype), w2_ref[...],
                            preferred_element_type=jnp.float32)

    # Epilogue on the last hidden chunk only: output bias + cast + store
    # (keeps the (1, D_out) broadcast out of the reduction loop).
    @pl.when(h_idx == pl.num_programs(1) - 1)
    def _():
        o_ref[...] = (acc_ref[...] + b2_ref[...]).astype(o_ref.dtype)


@functools.partial(jax.jit,
                   static_argnames=("block_m", "block_h", "compute_dtype"))
def mlp_forward(x, w1, b1, w2, b2, *, block_m=None, block_h=None,
                compute_dtype=jnp.bfloat16):
    """relu(x @ W1 + b1) @ W2 + b2.

    x: (B, S, D_in); w1: (D_in, H); b1: (H,); w2: (H, D_out); b2: (D_out,).
    Weights are stored (in, out), i.e. transposed vs torch.nn.Linear.
    compute_dtype: MXU operand dtype (default bf16; accumulation stays f32).
    """
    B, S, D_in = x.shape
    H = w1.shape[1]
    D_out = w2.shape[1]
    M = B * S
    out_dtype = x.dtype

    # ---- generation-aware tile / VMEM budget selection ---------------------
    vmem_cap = _vmem_capacity_bytes()
    big_vmem = vmem_cap >= (96 << 20)      # v5e / v6e (128 MiB) vs v7x (64 MiB)
    if block_m is None:
        block_m = 1024 if big_vmem else 512
    if block_h is None:
        block_h = 2048 if big_vmem else 1024

    # M tile: multiple of 128 so bf16 LHS tiles are vreg/MXU native and output
    # stores are lane-dense (only the ragged tail tile is partial).
    tm = _round_up(min(block_m, _round_up(M, 128)), 128)
    grid_m = pl.cdiv(M, tm)

    # Hidden chunk: multiple of 128; H is zero-padded (weights only) up to a
    # multiple of th so every chunk contraction is exact.
    th = min(_round_up(H, 128), _round_up(block_h, 128))
    h_p = _round_up(H, th)
    grid_h = h_p // th

    # Output features padded to lane width so kernel stores are lane-dense.
    # TODO(synk): consider 256-alignment of th / d_out_p for the 256-wide MXU
    # on v6e/v7x when the natural dims are already >= 256.
    d_out_p = _round_up(D_out, 128)

    # ---- weight-side padding / casting (small; cast fuses with the pad) ----
    w1p = jnp.pad(w1, ((0, 0), (0, h_p - H)))
    w2p = jnp.pad(w2, ((0, h_p - H), (0, d_out_p - D_out)))
    if compute_dtype is not None:
        w1p = w1p.astype(compute_dtype)
        w2p = w2p.astype(compute_dtype)
    b1p = jnp.pad(b1, (0, h_p - H)).astype(jnp.float32).reshape(1, h_p)
    b2p = jnp.pad(b2, (0, d_out_p - D_out)).astype(jnp.float32).reshape(1, d_out_p)

    # x: reshape only — no HBM pad/copy of the activations.
    x2d = x.reshape(M, D_in)

    # ---- VMEM budget (headroomed, capped at ~80% of physical capacity) -----
    x_itm = jnp.dtype(x2d.dtype).itemsize
    w_itm = jnp.dtype(w1p.dtype).itemsize
    out_itm = jnp.dtype(out_dtype).itemsize
    n_xbuf = 1 if grid_m == 1 else 2
    n_wbuf = 1 if grid_h == 1 else 2
    vmem_needed = (
        n_xbuf * tm * D_in * x_itm                       # streamed x tile(s)
        + n_wbuf * (D_in * th + th * d_out_p) * w_itm    # W1 / W2 chunk(s)
        + n_wbuf * th * 4 + d_out_p * 4                  # b1 / b2
        + 2 * tm * d_out_p * out_itm                     # pipelined out tile
        + tm * d_out_p * 4                               # f32 accumulator
        + tm * th * 4 + tm * th * w_itm                  # h chunk (f32 + cast)
        + tm * D_in * w_itm                              # cast x tile
    )
    vmem_limit = int(min(max(int(1.25 * vmem_needed) + (4 << 20), 32 << 20),
                         int(0.8 * vmem_cap)))

    cost = pl.CostEstimate(
        flops=2 * M * (D_in * h_p + h_p * d_out_p),
        transcendentals=0,
        bytes_accessed=(x2d.size * x_itm + w1p.size * w_itm + w2p.size * w_itm
                        + b1p.size * 4 + b2p.size * 4 + M * d_out_p * out_itm),
    )

    # TODO(synk): if profiling shows exposed x-tile DMA at small H/D_out,
    # deepen x buffering with pipeline_mode=pl.Buffered(3) (VMEM permitting).
    out2d = pl.pallas_call(
        _mlp_kernel,
        out_shape=jax.ShapeDtypeStruct((M, d_out_p), out_dtype),
        grid_spec=pltpu.PrefetchScalarGridSpec(
            num_scalar_prefetch=0,
            grid=(grid_m, grid_h),                       # reduction axis last
            in_specs=[
                _block_spec((tm, D_in), lambda i, h: (i, 0),
                            invariant=(grid_m == 1)),            # x tile
                _block_spec((D_in, th), lambda i, h: (0, h),
                            invariant=(grid_h == 1)),            # W1 chunk
                _block_spec((1, th), lambda i, h: (0, h),
                            invariant=(grid_h == 1)),            # b1 chunk
                _block_spec((th, d_out_p), lambda i, h: (h, 0),
                            invariant=(grid_h == 1)),            # W2 chunk
                _block_spec((1, d_out_p), lambda i, h: (0, 0),
                            invariant=True),                     # b2
            ],
            out_specs=pl.BlockSpec((tm, d_out_p), lambda i, h: (i, 0)),
            scratch_shapes=[pltpu.VMEM((tm, d_out_p), jnp.float32)],
        ),
        compiler_params=pltpu.CompilerParams(
            # TODO(synk): on v7x verify "parallel" shards M across both
            # TensorCores; otherwise switch this axis to pltpu.CORE_PARALLEL.
            dimension_semantics=("parallel", "arbitrary"),
            vmem_limit_bytes=vmem_limit,
        ),
        cost_estimate=cost,
    )(x2d, w1p, b1p, w2p, b2p)

    if d_out_p != D_out:
        out2d = out2d[:, :D_out]
    return out2d.reshape(B, S, D_out)


def reference_forward(x, w1, b1, w2, b2):
    h = jnp.maximum(jnp.einsum("bsd,dh->bsh", x, w1) + b1, 0.0)
    return jnp.einsum("bsh,ho->bso", h, w2) + b2


if __name__ == "__main__":
    # Module hyper-parameters (create_feedforward defaults):
    input_dim = 32
    output_dim = 16
    hidden_dim = output_dim * 2  # = 32, num_hidden_layers = 1

    B, S = 2, 8  # batch, seq

    key = jax.random.PRNGKey(0)
    kx, k1, kb1, k2, kb2 = jax.random.split(key, 5)

    x = jax.random.normal(kx, (B, S, input_dim), dtype=jnp.float32)

    # Deterministic parameter init; stored as (in, out), i.e. the transpose of
    # torch.nn.Linear's (out, in) weight.
    w1 = jax.random.normal(k1, (input_dim, hidden_dim), jnp.float32) / jnp.sqrt(input_dim)
    b1 = jax.random.normal(kb1, (hidden_dim,), jnp.float32) * 0.01
    w2 = jax.random.normal(k2, (hidden_dim, output_dim), jnp.float32) / jnp.sqrt(hidden_dim)
    b2 = jax.random.normal(kb2, (output_dim,), jnp.float32) * 0.01

    ref = reference_forward(x, w1, b1, w2, b2)

    # Default path: bf16 MXU operands, f32 accumulation (loose tolerance).
    out_bf16 = jax.block_until_ready(mlp_forward(x, w1, b1, w2, b2))
    assert out_bf16.shape == (B, S, output_dim), out_bf16.shape
    assert out_bf16.dtype == x.dtype
    assert jnp.allclose(out_bf16, ref, atol=5e-2, rtol=5e-2), "bf16 path mismatch"

    # Full-precision path for exactness checking.
    out_f32 = jax.block_until_ready(
        mlp_forward(x, w1, b1, w2, b2, compute_dtype=jnp.float32))
    assert jnp.allclose(out_f32, ref, atol=1e-5, rtol=1e-5), "f32 path mismatch"

    print("KERNEL_OK")
</pallas_src>

<mosaic_0001>
module attributes {stable_mosaic.version = 11 : i64} {
  func.func @_mlp_kernel(%arg0: i32, %arg1: i32, %arg2: memref<128x32xf32, #tpu.memory_space<vmem>>, %arg3: memref<32x128xbf16, #tpu.memory_space<vmem>>, %arg4: memref<1x128xf32, #tpu.memory_space<vmem>>, %arg5: memref<128x128xbf16, #tpu.memory_space<vmem>>, %arg6: memref<1x128xf32, #tpu.memory_space<vmem>>, %arg7: memref<128x128xf32, #tpu.memory_space<vmem>>, %arg8: memref<128x128xf32, #tpu.memory_space<vmem>>) attributes {dimension_semantics = [#tpu.dimension_semantics<parallel>, #tpu.dimension_semantics<arbitrary>], iteration_bounds = array<i64: 1, 1>, scalar_prefetch = 0 : i64, scratch_operands = 1 : i64, tpu.core_type = #tpu.core_type<tc>, window_params = [{pipeline_mode = #tpu.pipeline_mode<synchronous>, transform_indices = @transform_0, window_bounds = array<i64: 128, 32>}, {pipeline_mode = #tpu.pipeline_mode<synchronous>, transform_indices = @transform_1, window_bounds = array<i64: 32, 128>}, {pipeline_mode = #tpu.pipeline_mode<synchronous>, transform_indices = @transform_2, window_bounds = array<i64: 1, 128>}, {pipeline_mode = #tpu.pipeline_mode<synchronous>, transform_indices = @transform_3, window_bounds = array<i64: 128, 128>}, {pipeline_mode = #tpu.pipeline_mode<synchronous>, transform_indices = @transform_4, window_bounds = array<i64: 1, 128>}, {transform_indices = @transform_5, window_bounds = array<i64: 128, 128>}]} {
    %c0_i32 = arith.constant 0 : i32
    %0 = arith.cmpi eq, %arg1, %c0_i32 : i32
    %1 = arith.extui %0 : i1 to i32
    %c0_i32_0 = arith.constant 0 : i32
    %2 = arith.cmpi ne, %1, %c0_i32_0 : i32
    scf.if %2 {
      %cst_16 = arith.constant 0.000000e+00 : f32
      %21 = vector.broadcast %cst_16 : f32 to vector<128x128xf32>
      %c0_17 = arith.constant 0 : index
      %c0_18 = arith.constant 0 : index
      %22 = vector.load %arg8[%c0_17, %c0_18] : memref<128x128xf32, #tpu.memory_space<vmem>>, vector<128x128xf32>
      tpu.vector_store %arg8[%c0_17, %c0_18], %21 {strides = array<i32>} : memref<128x128xf32, #tpu.memory_space<vmem>>, vector<128x128xf32>,
    } else {
    }
    %c0 = arith.constant 0 : index
    %c0_1 = arith.constant 0 : index
    %3 = vector.load %arg2[%c0, %c0_1] : memref<128x32xf32, #tpu.memory_space<vmem>>, vector<128x32xf32>
    %4 = arith.truncf %3 : vector<128x32xf32> to vector<128x32xbf16>
    %c0_2 = arith.constant 0 : index
    %c0_3 = arith.constant 0 : index
    %5 = vector.load %arg3[%c0_2, %c0_3] : memref<32x128xbf16, #tpu.memory_space<vmem>>, vector<32x128xbf16>
    %cst = arith.constant dense<0.000000e+00> : vector<128x128xf32>
    %6 = tpu.matmul %4, %5, %cst {dimension_numbers = #tpu.dot_dimension_numbers<[1], [0], [0], [1], [0, 0, 1, 1], [], []>} : vector<128x32xbf16>, vector<32x128xbf16>, vector<128x128xf32> -> vector<128x128xf32>
    %c0_4 = arith.constant 0 : index
    %c0_5 = arith.constant 0 : index
    %7 = vector.load %arg4[%c0_4, %c0_5] : memref<1x128xf32, #tpu.memory_space<vmem>>, vector<1x128xf32>
    %8 = vector.broadcast %7 : vector<1x128xf32> to vector<128x128xf32>
    %9 = arith.addf %6, %8 : vector<128x128xf32>
    %cst_6 = arith.constant 0.000000e+00 : f32
    %10 = vector.broadcast %cst_6 : f32 to vector<128x128xf32>
    %11 = arith.maximumf %9, %10 : vector<128x128xf32>
    %c0_7 = arith.constant 0 : index
    %c0_8 = arith.constant 0 : index
    %12 = vector.load %arg8[%c0_7, %c0_8] : memref<128x128xf32, #tpu.memory_space<vmem>>, vector<128x128xf32>
    %13 = arith.truncf %11 : vector<128x128xf32> to vector<128x128xbf16>
    %c0_9 = arith.constant 0 : index
    %c0_10 = arith.constant 0 : index
    %14 = vector.load %arg5[%c0_9, %c0_10] : memref<128x128xbf16, #tpu.memory_space<vmem>>, vector<128x128xbf16>
    %cst_11 = arith.constant dense<0.000000e+00> : vector<128x128xf32>
    %15 = tpu.matmul %13, %14, %cst_11 {dimension_numbers = #tpu.dot_dimension_numbers<[1], [0], [0], [1], [0, 0, 1, 1], [], []>} : vector<128x128xbf16>, vector<128x128xbf16>, vector<128x128xf32> -> vector<128x128xf32>
    %16 = arith.addf %12, %15 : vector<128x128xf32>
    %c0_12 = arith.constant 0 : index
    %c0_13 = arith.constant 0 : index
    %17 = vector.load %arg8[%c0_12, %c0_13] : memref<128x128xf32, #tpu.memory_space<vmem>>, vector<128x128xf32>
    tpu.vector_store %arg8[%c0_12, %c0_13], %16 {strides = array<i32>} : memref<128x128xf32, #tpu.memory_space<vmem>>, vector<128x128xf32>,
    %c0_i32_14 = arith.constant 0 : i32
    %18 = arith.cmpi eq, %arg1, %c0_i32_14 : i32
    %19 = arith.extui %18 : i1 to i32
    %c0_i32_15 = arith.constant 0 : i32
    %20 = arith.cmpi ne, %19, %c0_i32_15 : i32
    scf.if %20 {
      %c0_16 = arith.constant 0 : index
      %c0_17 = arith.constant 0 : index
      %21 = vector.load %arg8[%c0_16, %c0_17] : memref<128x128xf32, #tpu.memory_space<vmem>>, vector<128x128xf32>
      %c0_18 = arith.constant 0 : index
      %c0_19 = arith.constant 0 : index
      %22 = vector.load %arg6[%c0_18, %c0_19] : memref<1x128xf32, #tpu.memory_space<vmem>>, vector<1x128xf32>
      %23 = vector.broadcast %22 : vector<1x128xf32> to vector<128x128xf32>
      %24 = arith.addf %21, %23 : vector<128x128xf32>
      %c0_20 = arith.constant 0 : index
      %c0_21 = arith.constant 0 : index
      %25 = vector.load %arg7[%c0_20, %c0_21] : memref<128x128xf32, #tpu.memory_space<vmem>>, vector<128x128xf32>
      tpu.vector_store %arg7[%c0_20, %c0_21], %24 {strides = array<i32>} : memref<128x128xf32, #tpu.memory_space<vmem>>, vector<128x128xf32>,
    } else {
    }
    return
  }
  func.func @transform_0(%arg0: i32, %arg1: i32) -> (i32, i32) {
    %c0_i32 = arith.constant 0 : i32
    %c0_i32_0 = arith.constant 0 : i32
    return %arg0, %c0_i32 : i32, i32
  }
  func.func @transform_1(%arg0: i32, %arg1: i32) -> (i32, i32) {
    %c0_i32 = arith.constant 0 : i32
    %c0_i32_0 = arith.constant 0 : i32
    return %c0_i32, %arg1 : i32, i32
  }
  func.func @transform_2(%arg0: i32, %arg1: i32) -> (i32, i32) {
    %c0_i32 = arith.constant 0 : i32
    %c0_i32_0 = arith.constant 0 : i32
    return %c0_i32, %arg1 : i32, i32
  }
  func.func @transform_3(%arg0: i32, %arg1: i32) -> (i32, i32) {
    %c0_i32 = arith.constant 0 : i32
    %c0_i32_0 = arith.constant 0 : i32
    return %arg1, %c0_i32 : i32, i32
  }
  func.func @transform_4(%arg0: i32, %arg1: i32) -> (i32, i32) {
    %c0_i32 = arith.constant 0 : i32
    %c0_i32_0 = arith.constant 0 : i32
    %c0_i32_1 = arith.constant 0 : i32
    return %c0_i32, %c0_i32_0 : i32, i32
  }
  func.func @transform_5(%arg0: i32, %arg1: i32) -> (i32, i32) {
    %c0_i32 = arith.constant 0 : i32
    %c0_i32_0 = arith.constant 0 : i32
    return %arg0, %c0_i32 : i32, i32
  }
}

</mosaic_0001>

<bundles_post_ra>
// kernel: mlp_forward.1
= control target key start
LH: loop header
LB: loop body
LE: loop exit
PB: predicated region body
PF: predicated region fallthrough
CT: control target
= control target key end

     0   :  { %vm88_vm0 = vcmask 261120   ;;  %s797_s0 = inlined_call_operand.vmem [shape: f32[16,32], index: 0, kind: input, shape index: {}]   ;;  %s798_s1 = inlined_call_operand.vmem [shape: bf16[32,128], index: 1, kind: input, shape index: {}]   ;;  %s799_s2 = inlined_call_operand.vmem [shape: f32[1,128], index: 2, kind: input, shape index: {}]   ;;  %s800_s3 = inlined_call_operand.vmem [shape: bf16[128,128], index: 3, kind: input, shape index: {}]   ;;  %s801_s4 = inlined_call_operand.vmem [shape: f32[1,128], index: 4, kind: input, shape index: {}]   ;;  %s802_s5 = inlined_call_operand.vmem [shape: f32[16,128], index: 5, kind: output, shape index: {}]  }
   0x1   :  { %v659_v0 = vld [vmem:[%s798_s1] sm:$0xff]   ;;  %v660_v1 = vld [vmem:[%s798_s1 + $0x8] sm:$0xff]   ;;  %v43_v5 = vld [vmem:[%s797_s0 + $0x10] sm:$0xff] }
   0x2   :  { %591 = vmatprep.subr.bf16.mxu0 %v659_v0  ;;  %v41_v2 = vld [vmem:[%s797_s0] sm:$0xff]  ;;  %v42_v3 = vld [vmem:[%s797_s0 + $0x8] sm:$0xff]  ;;  %v44_v6 = vld [vmem:[%s797_s0 + $0x18] sm:$0xff] }
   0x3   :  { %592 = vmatpush3.bf16.msra.mxu0 %v659_v0  ;;  %v57_v4 = vpack.c.bf16 %v42_v3, %v41_v2  ;;  %v45_v7 = vld [vmem:[%s797_s0 + $0x20] sm:$0xff]  ;;  %v46_v8 = vld [vmem:[%s797_s0 + $0x28] sm:$0xff]  ;;  %v58_v9 = vpack.c.bf16 %v44_v6, %v43_v5  ;;  %v47_v12 = vld [vmem:[%s797_s0 + $0x30] sm:$0xff] }
   0x4   :  { %593 = vmatprep.subr.bf16.mxu0 %v660_v1  ;;  %v59_v10 = vpack.c.bf16 %v46_v8, %v45_v7  ;;  %v661_v11 = vld [vmem:[%s800_s3] sm:$0xff]   ;;  %v48_v13 = vld [vmem:[%s797_s0 + $0x38] sm:$0xff]  ;;  %v662_v14 = vld [vmem:[%s800_s3 + $0x8] sm:$0xff]  }
   0x5   :  { %595 = vmatprep.mubr.msk.bf16.mxu0 %vm88_vm0, %v57_v4  ;;  %v49_v15 = vld [vmem:[%s797_s0 + $0x40] sm:$0xff]  ;;  %v50_v16 = vld [vmem:[%s797_s0 + $0x48] sm:$0xff]  ;;  %643 = vmatprep.subr.bf16.mxu1 %v661_v11  ;;  %v663_v17 = vld [vmem:[%s800_s3 + $0x10] sm:$0xff]   ;;  %v60_v18 = vpack.c.bf16 %v48_v13, %v47_v12 }
   0x6   :  { %651 = vmatpush3.bf16.msra.mxu1 %v661_v11  ;;  %v61_v19 = vpack.c.bf16 %v50_v16, %v49_v15  ;;  %v664_v20 = vld [vmem:[%s800_s3 + $0x18] sm:$0xff]   ;;  %v51_v21 = vld [vmem:[%s797_s0 + $0x50] sm:$0xff]  ;;  %v53_v23 = vld [vmem:[%s797_s0 + $0x60] sm:$0xff] }
   0x7   :  { %594 = vmatpush3.bf16.msra.mxu0 %v660_v1  ;;  %644 = vmatprep.subr.bf16.mxu1 %v662_v14  ;;  %v52_v22 = vld [vmem:[%s797_s0 + $0x58] sm:$0xff]  ;;  %v54_v24 = vld [vmem:[%s797_s0 + $0x68] sm:$0xff]  ;;  %v665_v25 = vld [vmem:[%s800_s3 + $0x20] sm:$0xff]  }
   0x8   :  { %611 = vmatprep.subr.bf16.mxu0 %v661_v11  ;;  %v62_v26 = vpack.c.bf16 %v52_v22, %v51_v21  ;;  %v63_v27 = vpack.c.bf16 %v54_v24, %v53_v23  ;;  %v666_v28 = vld [vmem:[%s800_s3 + $0x28] sm:$0xff]   ;;  %v55_v29 = vld [vmem:[%s797_s0 + $0x70] sm:$0xff]  ;;  %v56_v30 = vld [vmem:[%s797_s0 + $0x78] sm:$0xff] }
   0x9   :  { %v64_v31 = vpack.c.bf16 %v56_v30, %v55_v29  ;;  %v667_v32 = vld [vmem:[%s800_s3 + $0x30] sm:$0xff]   ;;  %v668_v33 = vld [vmem:[%s800_s3 + $0x38] sm:$0xff]   ;;  %v545_v34 = vld [vmem:[%s799_s2] ss:$0 sm:$0xff] }
   0xa   :  { %596 = vmatmul.mubr.msk.bf16.vlgmr.msra.gmra.mrb[0].mxu0 %vm88_vm0, %v58_v9  ;;  %652 = vmatpush3.bf16.msra.mxu1 %v662_v14 }
   0xb   :  { %599 = vmatprep.mubr.msk.bf16.mxu0 %vm88_vm0, %v59_v10  ;;  %612 = vmatpush3.bf16.msra.mxu0 %v661_v11 }
   0xc   :  { %613 = vmatprep.subr.bf16.mxu0 %v662_v14  ;;  %645 = vmatprep.subr.bf16.mxu1 %v663_v17 }
   0xe   :  { %653 = vmatpush3.bf16.msra.mxu1 %v663_v17 }
   0xf   :  { %614 = vmatpush3.bf16.msra.mxu0 %v662_v14  ;;  %646 = vmatprep.subr.bf16.mxu1 %v664_v20 }
  0x10   :  { %615 = vmatprep.subr.bf16.mxu0 %v663_v17 }
  0x12   :  { %600 = vmatmul.mubr.msk.bf16.gmra.mrb[4].mxu0 %vm88_vm0, %v60_v18  ;;  %654 = vmatpush3.bf16.msra.mxu1 %v664_v20 }
  0x13   :  { %603 = vmatprep.mubr.msk.bf16.mxu0 %vm88_vm0, %v61_v19  ;;  %616 = vmatpush3.bf16.msra.mxu0 %v663_v17 }
  0x14   :  { %617 = vmatprep.subr.bf16.mxu0 %v664_v20  ;;  %647 = vmatprep.subr.bf16.mxu1 %v665_v25 }
  0x16   :  { %655 = vmatpush3.bf16.msra.mxu1 %v665_v25 }
  0x17   :  { %618 = vmatpush3.bf16.msra.mxu0 %v664_v20  ;;  %648 = vmatprep.subr.bf16.mxu1 %v666_v28 }
  0x18   :  { %619 = vmatprep.subr.bf16.mxu0 %v665_v25 }
  0x1a   :  { %604 = vmatmul.mubr.msk.bf16.gmra.mrb[8].mxu0 %vm88_vm0, %v62_v26  ;;  %656 = vmatpush3.bf16.msra.mxu1 %v666_v28 }
  0x1b   :  { %607 = vmatprep.mubr.msk.bf16.mxu0 %vm88_vm0, %v63_v27  ;;  %620 = vmatpush3.bf16.msra.mxu0 %v665_v25  ;;  %v564_v27 = vld [vmem:[%s801_s4] ss:$0 sm:$0xff] }
  0x1c   :  { %621 = vmatprep.subr.bf16.mxu0 %v666_v28  ;;  %649 = vmatprep.subr.bf16.mxu1 %v667_v32 }
  0x1e   :  { %657 = vmatpush3.bf16.msra.mxu1 %v667_v32 }
  0x1f   :  { %622 = vmatpush3.bf16.msra.mxu0 %v666_v28  ;;  %650 = vmatprep.subr.bf16.mxu1 %v668_v33 }
  0x20   :  { %623 = vmatprep.subr.bf16.mxu0 %v667_v32 }
  0x22   :  { %608 = vmatmul.mubr.msk.bf16.gmra.mrb[12].mxu0 %vm88_vm0, %v64_v31  ;;  %658 = vmatpush3.bf16.msra.mxu1 %v668_v33 }
  0x23   :  { %624 = vmatpush3.bf16.msra.mxu0 %v667_v32 }
  0x24   :  { %625 = vmatprep.subr.bf16.mxu0 %v668_v33 }
  0x27   :  { %626 = vmatpush3.bf16.msra.mxu0 %v668_v33 }
  0xdd   :  { %v597_v35 = vpop.f32.mrb[0].mxu0 }
  0xde   :  { %v156_v36 = vadd.f32 %v597_v35, %v545_v34  ;;  %v147_v37 = vpop.f32.mrb[1].mxu0 }
  0xdf   :  { %v148_v38 = vadd.f32 %v545_v34, %v147_v37  ;;  %v598_v39 = vpop.f32.mrb[2].mxu0 }
  0xe0   :  { %v159_v40 = vadd.f32 %v598_v39, %v545_v34  ;;  %v150_v41 = vpop.f32.mrb[3].mxu0  ;;  %v212_v43 = vmax.f32 %v156_v36, 0.0 }
  0xe1   :  { %v151_v42 = vadd.f32 %v545_v34, %v150_v41  ;;  %v210_v45 = vmax.f32 %v148_v38, 0.0 }
  0xe2   :  { %v213_v44 = vmax.f32 %v159_v40, 0.0 }
  0xe3   :  { %v211_v46 = vmax.f32 %v151_v42, 0.0 }
  0xe4   :  { %v243_v47 = vpack.c.bf16 %v213_v44, %v212_v43 }
  0xe5   :  { %v242_v48 = vpack.c.bf16 %v211_v46, %v210_v45  ;;  %v601_v49 = vpop.f32.mrb[4].mxu0 }
  0xe6   :  { %v172_v50 = vadd.f32 %v601_v49, %v545_v34  ;;  %v163_v51 = vpop.f32.mrb[5].mxu0 }
  0xe7   :  { %v164_v52 = vadd.f32 %v545_v34, %v163_v51  ;;  %v602_v53 = vpop.f32.mrb[6].mxu0  ;;  %627 = vmatprep.mubr.bf16.mxu0 %v242_v48 }
  0xe8   :  { %v175_v54 = vadd.f32 %v602_v53, %v545_v34  ;;  %v166_v55 = vpop.f32.mrb[7].mxu0  ;;  %628 = vmatmul.mubr.bf16.vlgmr.msra.gmra.mrb[16].mxu0 %v243_v47  ;;  %v216_v57 = vmax.f32 %v172_v50, 0.0 }
  0xe9   :  { %v167_v56 = vadd.f32 %v545_v34, %v166_v55  ;;  %v214_v59 = vmax.f32 %v164_v52, 0.0 }
  0xea   :  { %v217_v58 = vmax.f32 %v175_v54, 0.0 }
  0xeb   :  { %v215_v60 = vmax.f32 %v167_v56, 0.0 }
  0xec   :  { %v245_v61 = vpack.c.bf16 %v217_v58, %v216_v57 }
  0xed   :  { %v605_v62 = vpop.f32.mrb[8].mxu0  ;;  %v244_v63 = vpack.c.bf16 %v215_v60, %v214_v59 }
  0xee   :  { %v188_v0 = vadd.f32 %v605_v62, %v545_v34  ;;  %v179_v1 = vpop.f32.mrb[9].mxu0 }
  0xef   :  { %v180_v2 = vadd.f32 %v545_v34, %v179_v1  ;;  %v606_v3 = vpop.f32.mrb[10].mxu0  ;;  %631 = vmatprep.mubr.bf16.mxu1 %v244_v63 }
  0xf0   :  { %v191_v4 = vadd.f32 %v606_v3, %v545_v34  ;;  %v182_v5 = vpop.f32.mrb[11].mxu0  ;;  %632 = vmatmul.mubr.bf16.vlgmr.msra.gmra.mrb[0].mxu1 %v245_v61  ;;  %v220_v7 = vmax.f32 %v188_v0, 0.0 }
  0xf1   :  { %v183_v6 = vadd.f32 %v545_v34, %v182_v5  ;;  %v218_v9 = vmax.f32 %v180_v2, 0.0 }
  0xf2   :  { %v221_v8 = vmax.f32 %v191_v4, 0.0 }
  0xf3   :  { %v219_v10 = vmax.f32 %v183_v6, 0.0 }
  0xf4   :  { %v247_v11 = vpack.c.bf16 %v221_v8, %v220_v7 }
  0xf5   :  { %v246_v12 = vpack.c.bf16 %v219_v10, %v218_v9  ;;  %v609_v13 = vpop.f32.mrb[12].mxu0 }
  0xf6   :  { %v204_v14 = vadd.f32 %v609_v13, %v545_v34  ;;  %v195_v15 = vpop.f32.mrb[13].mxu0 }
  0xf7   :  { %v196_v16 = vadd.f32 %v545_v34, %v195_v15  ;;  %v610_v17 = vpop.f32.mrb[14].mxu0  ;;  %635 = vmatprep.mubr.bf16.mxu1 %v246_v12 }
  0xf8   :  { %v207_v18 = vadd.f32 %v610_v17, %v545_v34  ;;  %v198_v19 = vpop.f32.mrb[15].mxu0  ;;  %636 = vmatmul.mubr.bf16.gmra.mrb[4].mxu1 %v247_v11  ;;  %v224_v21 = vmax.f32 %v204_v14, 0.0 }
  0xf9   :  { %v199_v20 = vadd.f32 %v545_v34, %v198_v19  ;;  %v222_v23 = vmax.f32 %v196_v16, 0.0 }
  0xfa   :  { %v225_v22 = vmax.f32 %v207_v18, 0.0 }
  0xfb   :  { %v223_v24 = vmax.f32 %v199_v20, 0.0 }
  0xfc   :  { %v249_v25 = vpack.c.bf16 %v225_v22, %v224_v21 }
  0xfd   :  { %v248_v26 = vpack.c.bf16 %v223_v24, %v222_v23 }
  0xff   :  { %639 = vmatprep.mubr.bf16.mxu1 %v248_v26 }
 0x100   :  { %640 = vmatmul.mubr.bf16.gmra.mrb[8].mxu1 %v249_v25 }
 0x1bb   :  { %v629_v28 = vpop.f32.mrb[16].mxu0 }
 0x1bc   :  { %v348_v29 = vpop.f32.mrb[17].mxu0 }
 0x1bd   :  { %v469_v30 = vadd.f32 %v564_v27, %v348_v29  ;;  %v630_v31 = vpop.f32.mrb[18].mxu0 }
 0x1be   :  { %v351_v32 = vpop.f32.mrb[19].mxu0 }
 0x1bf   :  { %533 = vst [vmem:[%s802_s5] sm:$0xff] %v469_v30  ;;  %v470_v33 = vadd.f32 %v564_v27, %v351_v32 }
 0x1c1   :  { %535 = vst [vmem:[%s802_s5 + $0x8] sm:$0xff] %v470_v33 }
 0x1c3   :  { %v633_v34 = vpop.f32.mrb[0].mxu1 }
 0x1c4   :  { %v364_v35 = vpop.f32.mrb[1].mxu1 }
 0x1c5   :  { %v634_v36 = vpop.f32.mrb[2].mxu1 }
 0x1c6   :  { %v367_v37 = vpop.f32.mrb[3].mxu1 }
 0x1cb   :  { %v637_v38 = vpop.f32.mrb[4].mxu1 }
 0x1cc   :  { %v380_v39 = vpop.f32.mrb[5].mxu1 }
 0x1cd   :  { %v638_v40 = vpop.f32.mrb[6].mxu1 }
 0x1ce   :  { %v383_v41 = vpop.f32.mrb[7].mxu1 }
 0x1d3   :  { %v641_v42 = vpop.f32.mrb[8].mxu1 }
 0x1d4   :  { %v396_v43 = vpop.f32.mrb[9].mxu1 }
 0x1d5   :  { %v642_v44 = vpop.f32.mrb[10].mxu1 }
 0x1d6   :  { %v399_v45 = vpop.f32.mrb[11].mxu1 }

</bundles_post_ra>
